<compile_context>
chip_gen: v7x
topology: tpu7x:2x2x1
jax: 0.10.0
libtpu: 0.0.40
codegen_flags: <defaults>
</compile_context>

<pallas_src>
import jax
import jax.numpy as jnp
from jax.experimental import pallas as pl
from jax.experimental.pallas import tpu as pltpu


def _round_up(x, m):
    return ((x + m - 1) // m) * m


_VMEM_LIMIT = 48 * 1024 * 1024        # explicit scoped-VMEM cap (safe on v5e/v6e/v7x)
_MAIN_TILE_BUDGET = 24 * 1024 * 1024  # budget for the main kernel's pipeline tiles
_NORM_TILE_BUDGET = 20 * 1024 * 1024  # budget for the normalize prepass tiles


# ---------------------------------------------------------------------------
# 1) Fused prepass: L2-normalize rows of both tensors, cast, zero-pad.
# ---------------------------------------------------------------------------
def _make_normalize_kernel(b, d, d_pad, block_rows, row_masked):
    pad_cols = d_pad - d

    def kernel(t_ref, r_ref, to_ref, ro_ref):
        i = pl.program_id(0)

        def norm_one(x_ref, o_ref):
            x = x_ref[...].astype(jnp.float32)
            sumsq = jnp.sum(x * x, axis=-1, keepdims=True)
            # 1/max(||x||, 1e-12) == rsqrt(max(||x||^2, 1e-24))   (EUP, no divide)
            inv = jax.lax.rsqrt(jnp.maximum(sumsq, jnp.float32(1e-24)))
            xn = x * inv
            if row_masked:
                # Rows past b (OOB / padded) are forced to exact zeros.
                row = i * block_rows + jax.lax.broadcasted_iota(
                    jnp.int32, xn.shape, 0)
                xn = jnp.where(row < b, xn, 0.0)
            if pad_cols:
                o_ref[:, pl.ds(0, d)] = xn.astype(o_ref.dtype)
                o_ref[:, pl.ds(d, pad_cols)] = jnp.zeros(
                    (block_rows, pad_cols), o_ref.dtype)
            else:
                o_ref[...] = xn.astype(o_ref.dtype)

        norm_one(t_ref, to_ref)
        norm_one(r_ref, ro_ref)

    return kernel


# ---------------------------------------------------------------------------
# 2) Tiled contrastive loss with online logsumexp.
# ---------------------------------------------------------------------------
def _make_clip_loss_kernel(b, block_b, block_d, nd, masked, precision):
    def dot_f32(t, r):
        # Contract the LAST dims of both operands (no transposed relayout).
        return jax.lax.dot_general(
            t, r, dimension_numbers=(((1,), (1,)), ((), ())),
            preferred_element_type=jnp.float32, precision=precision)

    def kernel(tgt_ref, rec_ref, loss_ref, m_sc, l_sc, diag_sc, *rest):
        qi = pl.program_id(0)
        ki = pl.program_id(1)
        di = pl.program_id(2)
        nk = pl.num_programs(1)

        # ---- init per query tile (start of the key sweep) ------------------
        @pl.when((ki == 0) & (di == 0))
        def _():
            m_sc[...] = jnp.full(m_sc.shape, -jnp.inf, m_sc.dtype)
            l_sc[...] = jnp.zeros_like(l_sc)
            diag_sc[...] = jnp.zeros_like(diag_sc)

        def process(s):
            # Positive-pair logits = diagonal of the (full-D) logits tile,
            # taken from the SAME values that feed the LSE.
            @pl.when(ki == qi)
            def _():
                r = jax.lax.broadcasted_iota(jnp.int32, s.shape, 0)
                c = jax.lax.broadcasted_iota(jnp.int32, s.shape, 1)
                diag_sc[...] = jnp.sum(jnp.where(r == c, s, 0.0),
                                       axis=-1, keepdims=True)

            def update(sv):
                m_prev = m_sc[...]
                m_new = jnp.maximum(m_prev, jnp.max(sv, axis=-1, keepdims=True))
                alpha = jnp.exp(m_prev - m_new)
                l_sc[...] = alpha * l_sc[...] + jnp.sum(
                    jnp.exp(sv - m_new), axis=-1, keepdims=True)
                m_sc[...] = m_new

            if masked:
                # Only the last key tile can contain padded key columns.
                @pl.when(ki == nk - 1)
                def _():
                    col = ki * block_b + jax.lax.broadcasted_iota(
                        jnp.int32, s.shape, 1)
                    update(jnp.where(col < b, s, -jnp.inf))

                @pl.when(ki != nk - 1)
                def _():
                    update(s)
            else:
                update(s)

            # ---- finalize per-row losses after the last key tile -----------
            @pl.when(ki == nk - 1)
            def _():
                lse = m_sc[...] + jnp.log(l_sc[...])
                loss_col = lse - diag_sc[...]
                if masked:
                    row = qi * block_b + jax.lax.broadcasted_iota(
                        jnp.int32, loss_col.shape, 0)
                    loss_col = jnp.where(row < b, loss_col, jnp.float32(0.0))
                loss_ref[...] = loss_col

        if nd == 1:
            # Full feature dim in one shot: logits stay in registers, no VMEM
            # scratch round trip.
            process(dot_f32(tgt_ref[...], rec_ref[...]))
        else:
            # Chunked D: resident full-D query tile, stream rec in D chunks,
            # accumulate logits in f32 scratch.
            (s_sc,) = rest

            @pl.when(di == 0)
            def _():
                s_sc[...] = jnp.zeros_like(s_sc)

            start = pl.multiple_of(di * block_d, block_d)
            s_sc[...] += dot_f32(tgt_ref[:, pl.ds(start, block_d)], rec_ref[...])

            @pl.when(di == nd - 1)
            def _():
                process(s_sc[...])

    return kernel


# ---------------------------------------------------------------------------
# Wrapper.
# ---------------------------------------------------------------------------
def clip_loss(reconstruct_features, target_features, *, reduction="mean",
              block_b=None, block_d=None, compute_dtype=jnp.bfloat16):
    """Pallas-TPU CLIP / InfoNCE loss (forward), matching the PyTorch module."""
    b, d = reconstruct_features.shape
    assert target_features.shape == (b, d), (target_features.shape, (b, d))
    compute_dtype = jnp.dtype(compute_dtype)
    isz = compute_dtype.itemsize

    # ---- tile selection -----------------------------------------------------
    user_bb = block_b is not None
    if block_b is None:
        if b <= 256:
            block_b = _round_up(b, 8)   # single query/key tile
        elif b <= 1024:
            block_b = 256               # MXU(256)-aligned, keeps nq >= 2 (v7x)
        else:
            block_b = 512               # higher flop/byte on the rec stream
    assert block_b % 8 == 0, block_b

    d_pad0 = _round_up(d, 128)
    if block_d is None:
        if 4 * block_b * d_pad0 * isz <= _MAIN_TILE_BUDGET:
            block_d = d_pad0            # nd == 1: no D chunking at all
        else:
            # Very large D: keep the full-D query tile resident, stream rec in
            # D chunks; shrink block_b (defaults only) until that fits.
            def resident(bb):
                return 2 * bb * d_pad0 * isz + bb * bb * 4
            while (not user_bb) and block_b > 128 and \
                    resident(block_b) + 2 * block_b * 128 * isz > _MAIN_TILE_BUDGET:
                block_b //= 2
            rem = max(_MAIN_TILE_BUDGET - resident(block_b),
                      2 * block_b * 128 * isz)
            block_d = min(d_pad0,
                          max(128, (rem // (2 * block_b * isz)) // 128 * 128))
    else:
        block_d = min(max(128, _round_up(block_d, 128)), d_pad0)
    assert block_d % 128 == 0, block_d

    d_pad = _round_up(d, block_d)
    nd = d_pad // block_d
    b_pad = _round_up(b, block_b)
    nq = b_pad // block_b
    masked = b_pad != b
    # Every key tile holds >= 1 valid column, so exp(m_prev - m_new) stays finite.
    assert b_pad - b < block_b

    # ---- prepass: fused L2-normalize + cast + zero-padding -------------------
    in_isz = max(jnp.dtype(reconstruct_features.dtype).itemsize,
                 jnp.dtype(target_features.dtype).itemsize)
    per_row = 2 * 2 * d * in_isz + 2 * 2 * d_pad * isz  # both tensors, dbl-buffered
    norm_rows = 8
    for c in sorted({block_b, 512, 256, 128, 64, 32, 16, 8}, reverse=True):
        if (c % 8 == 0 and b_pad % c == 0 and c <= _round_up(b, 8)
                and c * per_row <= _NORM_TILE_BUDGET):
            norm_rows = c
            break

    tgt_n, rec_n = pl.pallas_call(
        _make_normalize_kernel(b, d, d_pad, norm_rows, masked),
        out_shape=(jax.ShapeDtypeStruct((b_pad, d_pad), compute_dtype),
                   jax.ShapeDtypeStruct((b_pad, d_pad), compute_dtype)),
        grid=(b_pad // norm_rows,),
        in_specs=[pl.BlockSpec((norm_rows, d), lambda i: (i, 0)),
                  pl.BlockSpec((norm_rows, d), lambda i: (i, 0))],
        out_specs=[pl.BlockSpec((norm_rows, d_pad), lambda i: (i, 0)),
                   pl.BlockSpec((norm_rows, d_pad), lambda i: (i, 0))],
        compiler_params=pltpu.CompilerParams(
            dimension_semantics=("parallel",),
            vmem_limit_bytes=_VMEM_LIMIT),
    )(target_features, reconstruct_features)

    # ---- main kernel ----------------------------------------------------------
    precision = (jax.lax.Precision.HIGH
                 if compute_dtype == jnp.float32 else None)

    scratch = [pltpu.VMEM((block_b, 1), jnp.float32),   # running max  m
               pltpu.VMEM((block_b, 1), jnp.float32),   # running sum  l
               pltpu.VMEM((block_b, 1), jnp.float32)]   # diagonal logits
    if nd > 1:
        scratch.append(pltpu.VMEM((block_b, block_b), jnp.float32))  # logits acc

    per_row_loss = pl.pallas_call(
        _make_clip_loss_kernel(b, block_b, block_d, nd, masked, precision),
        out_shape=jax.ShapeDtypeStruct((b_pad, 1), jnp.float32),
        grid=(nq, nq, nd),
        in_specs=[
            # Query tile: full feature dim, resident across the whole key sweep.
            pl.BlockSpec((block_b, d_pad), lambda qi, ki, di: (qi, 0)),
            # Key tile: the only streamed operand.
            pl.BlockSpec((block_b, block_d), lambda qi, ki, di: (ki, di)),
        ],
        out_specs=pl.BlockSpec((block_b, 1), lambda qi, ki, di: (qi, 0)),
        scratch_shapes=scratch,
        compiler_params=pltpu.CompilerParams(
            dimension_semantics=("parallel", "arbitrary", "arbitrary"),
            vmem_limit_bytes=_VMEM_LIMIT),
    )(tgt_n, rec_n)

    if reduction == "mean":
        return jnp.sum(per_row_loss) / b
    if reduction == "sum":
        return jnp.sum(per_row_loss)
    if reduction == "none":
        return per_row_loss[:b, 0]
    raise ValueError(f"unsupported reduction: {reduction!r}")


# ---------------------------------------------------------------------------
# Pure-JAX reference (matches the PyTorch module in f32).
# ---------------------------------------------------------------------------
def _clip_loss_ref(rec, tgt, reduction="mean"):
    rec = rec.astype(jnp.float32)
    tgt = tgt.astype(jnp.float32)
    eps = 1e-12
    tgt_n = tgt / jnp.maximum(jnp.linalg.norm(tgt, axis=-1, keepdims=True), eps)
    rec_n = rec / jnp.maximum(jnp.linalg.norm(rec, axis=-1, keepdims=True), eps)
    logits = jnp.einsum("bd,cd->bc", tgt_n, rec_n,
                        precision=jax.lax.Precision.HIGHEST)
    lse = jax.scipy.special.logsumexp(logits, axis=-1)
    per_row = lse - jnp.diagonal(logits)
    if reduction == "mean":
        return jnp.mean(per_row)
    if reduction == "sum":
        return jnp.sum(per_row)
    return per_row


if __name__ == "__main__":
    key = jax.random.PRNGKey(0)
    k1, k2, k3, k4 = jax.random.split(key, 4)

    # Test 1: small single-tile path (default bf16 operands + f32 path).
    B, D = 8, 32
    rec = jax.random.normal(k1, (B, D), dtype=jnp.float32)
    tgt = jax.random.normal(k2, (B, D), dtype=jnp.float32)
    ref = _clip_loss_ref(rec, tgt)

    out = jax.block_until_ready(clip_loss(rec, tgt))                 # bf16 default
    assert jnp.allclose(out, ref, atol=5e-2, rtol=5e-2), (out, ref)

    out_f32 = jax.block_until_ready(
        clip_loss(rec, tgt, compute_dtype=jnp.float32))              # f32 / HIGH
    assert jnp.allclose(out_f32, ref, atol=2e-3, rtol=2e-3), (out_f32, ref)

    out_none = jax.block_until_ready(
        clip_loss(rec, tgt, reduction="none", compute_dtype=jnp.float32))
    ref_none = _clip_loss_ref(rec, tgt, reduction="none")
    assert jnp.allclose(out_none, ref_none, atol=2e-3, rtol=2e-3)

    # Test 2: chunked-D path with padding/masking (200->256 rows, 300->384 cols),
    # multi-tile grid (2 q-tiles x 2 k-tiles x 3 D-chunks), f32 operands.
    B2, D2 = 200, 300
    rec2 = jax.random.normal(k3, (B2, D2), dtype=jnp.float32)
    tgt2 = jax.random.normal(k4, (B2, D2), dtype=jnp.float32)
    ref2 = _clip_loss_ref(rec2, tgt2)

    out2 = jax.block_until_ready(
        clip_loss(rec2, tgt2, block_b=128, block_d=128,
                  compute_dtype=jnp.float32))
    assert jnp.allclose(out2, ref2, atol=2e-3, rtol=2e-3), (out2, ref2)

    # Test 3: default full-D bf16 path, single query tile, column padding only.
    out3 = jax.block_until_ready(clip_loss(rec2, tgt2))
    assert jnp.allclose(out3, ref2, atol=5e-2, rtol=5e-2), (out3, ref2)

    # Test 4: default full-D bf16 path with row padding + 2x2 query/key tiles.
    B4, D4 = 300, 300
    rec4 = jax.random.normal(k1, (B4, D4), dtype=jnp.float32)
    tgt4 = jax.random.normal(k2, (B4, D4), dtype=jnp.float32)
    ref4 = _clip_loss_ref(rec4, tgt4)
    out4 = jax.block_until_ready(clip_loss(rec4, tgt4))
    assert jnp.allclose(out4, ref4, atol=5e-2, rtol=5e-2), (out4, ref4)

    print("KERNEL_OK")
</pallas_src>

<mosaic_0001>
module attributes {stable_mosaic.version = 11 : i64} {
  func.func @kernel(%arg0: i32, %arg1: memref<8x32xf32, #tpu.memory_space<vmem>>, %arg2: memref<8x32xf32, #tpu.memory_space<vmem>>, %arg3: memref<8x128xbf16, #tpu.memory_space<vmem>>, %arg4: memref<8x128xbf16, #tpu.memory_space<vmem>>) attributes {dimension_semantics = [#tpu.dimension_semantics<parallel>], iteration_bounds = array<i64: 1>, scalar_prefetch = 0 : i64, scratch_operands = 0 : i64, tpu.core_type = #tpu.core_type<tc>, window_params = [{transform_indices = @transform_0, window_bounds = array<i64: 8, 32>}, {transform_indices = @transform_1, window_bounds = array<i64: 8, 32>}, {transform_indices = @transform_2, window_bounds = array<i64: 8, 128>}, {transform_indices = @transform_3, window_bounds = array<i64: 8, 128>}]} {
    %c0 = arith.constant 0 : index
    %c0_0 = arith.constant 0 : index
    %0 = vector.load %arg1[%c0, %c0_0] : memref<8x32xf32, #tpu.memory_space<vmem>>, vector<8x32xf32>
    %1 = arith.mulf %0, %0 : vector<8x32xf32>
    %cst = arith.constant dense<0.000000e+00> : vector<8xf32>
    %2 = vector.multi_reduction <add>, %1, %cst [1] : vector<8x32xf32> to vector<8xf32>
    %3 = vector.shape_cast %2 : vector<8xf32> to vector<8x1xf32>
    %cst_1 = arith.constant 1.000000e-24 : f32
    %4 = vector.broadcast %cst_1 : f32 to vector<8x1xf32>
    %5 = arith.maximumf %3, %4 : vector<8x1xf32>
    %6 = math.rsqrt %5 : vector<8x1xf32>
    %7 = vector.broadcast %6 : vector<8x1xf32> to vector<8x32xf32>
    %8 = arith.mulf %0, %7 : vector<8x32xf32>
    %9 = arith.truncf %8 : vector<8x32xf32> to vector<8x32xbf16>
    %c0_2 = arith.constant 0 : index
    %c0_3 = arith.constant 0 : index
    %10 = vector.load %arg3[%c0_2, %c0_3] : memref<8x128xbf16, #tpu.memory_space<vmem>>, vector<8x32xbf16>
    tpu.vector_store %arg3[%c0_2, %c0_3], %9 {strides = array<i32>} : memref<8x128xbf16, #tpu.memory_space<vmem>>, vector<8x32xbf16>,
    %cst_4 = arith.constant 0.000000e+00 : bf16
    %11 = vector.broadcast %cst_4 : bf16 to vector<8x96xbf16>
    %c0_5 = arith.constant 0 : index
    %c32 = arith.constant 32 : index
    %12 = vector.load %arg3[%c0_5, %c32] : memref<8x128xbf16, #tpu.memory_space<vmem>>, vector<8x96xbf16>
    tpu.vector_store %arg3[%c0_5, %c32], %11 {strides = array<i32>} : memref<8x128xbf16, #tpu.memory_space<vmem>>, vector<8x96xbf16>,
    %c0_6 = arith.constant 0 : index
    %c0_7 = arith.constant 0 : index
    %13 = vector.load %arg2[%c0_6, %c0_7] : memref<8x32xf32, #tpu.memory_space<vmem>>, vector<8x32xf32>
    %14 = arith.mulf %13, %13 : vector<8x32xf32>
    %cst_8 = arith.constant dense<0.000000e+00> : vector<8xf32>
    %15 = vector.multi_reduction <add>, %14, %cst_8 [1] : vector<8x32xf32> to vector<8xf32>
    %16 = vector.shape_cast %15 : vector<8xf32> to vector<8x1xf32>
    %cst_9 = arith.constant 1.000000e-24 : f32
    %17 = vector.broadcast %cst_9 : f32 to vector<8x1xf32>
    %18 = arith.maximumf %16, %17 : vector<8x1xf32>
    %19 = math.rsqrt %18 : vector<8x1xf32>
    %20 = vector.broadcast %19 : vector<8x1xf32> to vector<8x32xf32>
    %21 = arith.mulf %13, %20 : vector<8x32xf32>
    %22 = arith.truncf %21 : vector<8x32xf32> to vector<8x32xbf16>
    %c0_10 = arith.constant 0 : index
    %c0_11 = arith.constant 0 : index
    %23 = vector.load %arg4[%c0_10, %c0_11] : memref<8x128xbf16, #tpu.memory_space<vmem>>, vector<8x32xbf16>
    tpu.vector_store %arg4[%c0_10, %c0_11], %22 {strides = array<i32>} : memref<8x128xbf16, #tpu.memory_space<vmem>>, vector<8x32xbf16>,
    %cst_12 = arith.constant 0.000000e+00 : bf16
    %24 = vector.broadcast %cst_12 : bf16 to vector<8x96xbf16>
    %c0_13 = arith.constant 0 : index
    %c32_14 = arith.constant 32 : index
    %25 = vector.load %arg4[%c0_13, %c32_14] : memref<8x128xbf16, #tpu.memory_space<vmem>>, vector<8x96xbf16>
    tpu.vector_store %arg4[%c0_13, %c32_14], %24 {strides = array<i32>} : memref<8x128xbf16, #tpu.memory_space<vmem>>, vector<8x96xbf16>,
    return
  }
  func.func @transform_0(%arg0: i32) -> (i32, i32) {
    %c0_i32 = arith.constant 0 : i32
    %c0_i32_0 = arith.constant 0 : i32
    return %arg0, %c0_i32 : i32, i32
  }
  func.func @transform_1(%arg0: i32) -> (i32, i32) {
    %c0_i32 = arith.constant 0 : i32
    %c0_i32_0 = arith.constant 0 : i32
    return %arg0, %c0_i32 : i32, i32
  }
  func.func @transform_2(%arg0: i32) -> (i32, i32) {
    %c0_i32 = arith.constant 0 : i32
    %c0_i32_0 = arith.constant 0 : i32
    return %arg0, %c0_i32 : i32, i32
  }
  func.func @transform_3(%arg0: i32) -> (i32, i32) {
    %c0_i32 = arith.constant 0 : i32
    %c0_i32_0 = arith.constant 0 : i32
    return %arg0, %c0_i32 : i32, i32
  }
}

</mosaic_0001>

<bundles_post_ra>
// kernel: tpu_custom_call.1
= control target key start
LH: loop header
LB: loop body
LE: loop exit
PB: predicated region body
PF: predicated region fallthrough
CT: control target
= control target key end

     0   :  { %9 = vsyncpa [#allocation3], 0  ;;  %s277_s0 = inlined_call_operand.hbm [shape: f32[8,32], index: 0, kind: input, shape index: {}]   ;;  %s278_s1 = inlined_call_operand.hbm [shape: f32[8,32], index: 1, kind: input, shape index: {}]   ;;  %s279_s2 = inlined_call_operand.hbm [shape: bf16[8,128], index: 2, kind: output, shape index: {0}]   ;;  %s280_s3 = inlined_call_operand.hbm [shape: bf16[8,128], index: 3, kind: output, shape index: {1}]  }
   0x1   :  { %10 = vsyncpa [#allocation6], 0 }
   0x2   :  { %11 = vsyncpa [#allocation4], 0 }
   0x3   :  { %12 = vsyncpa [#allocation9], 0  ;;  %s200_s12 = smov [#allocation2]   ;;  %s201_s14 = smov [#allocation5]  }
   0x4   :  { %s19_s13 = sshll.u32 %s200_s12, 4  ;;  %s29_s15 = sshll.u32 %s201_s14, 4  ;;  %s20_s13 = int_to_ptr.vmem [resolvable:$true] %s19_s13  ;;  %s30_s15 = int_to_ptr.vmem [resolvable:$true] %s29_s15 }
   0x5   :  { %s104_s18 = scalar_lea.hbm %s277_s0, 128 }
   0x6   :  { %p105_p0 = scmp.ne.s32.totalorder %s277_s0, %s104_s18  ;;  %p108_p1 = scmp.lt.u32.totalorder %s104_s18, %s277_s0 }
   0x8   :  { %p110_p2 = pnand %p108_p1, %p105_p0 }
   0xa   :  { %113 = shalt.err (!%p110_p2)
}
   0xb   :  { %s114_s23 = scalar_lea.vmem %s20_s13, 128  ;;  %p119_p4 = scmp.lt.s32.totalorder %s20_s13, %s20_s13 }
   0xc   :  { %p115_p3 = scmp.ne.s32.totalorder %s20_s13, %s114_s23  ;;  %p120_p5 = scmp.lt.s32.totalorder %s114_s23, %s114_s23 }
   0xe   :  { %p121_p6 = por %p120_p5, %p119_p4 }
  0x10   :  { %p122_p7 = pnand %p121_p6, %p115_p3 }
  0x12   :  { %125 = shalt.err (!%p122_p7)
}
  0x13   :  { %22 = dma.hbm_to_vmem [thread:$0]  %s277_s0, 128, %s20_s13, [#allocation3]  }
  0x14   :  { %s126_s28 = scalar_lea.hbm %s278_s1, 128 }
  0x15   :  { %p127_p8 = scmp.ne.s32.totalorder %s278_s1, %s126_s28  ;;  %p130_p9 = scmp.lt.u32.totalorder %s126_s28, %s278_s1 }
  0x17   :  { %p132_p10 = pnand %p130_p9, %p127_p8 }
  0x19   :  { %135 = shalt.err (!%p132_p10)
}
  0x1a   :  { %s136_s6 = scalar_lea.vmem %s30_s15, 128  ;;  %p141_p12 = scmp.lt.s32.totalorder %s30_s15, %s30_s15 }
  0x1b   :  { %p137_p11 = scmp.ne.s32.totalorder %s30_s15, %s136_s6  ;;  %p142_p13 = scmp.lt.s32.totalorder %s136_s6, %s136_s6 }
  0x1d   :  { %p143_p0 = por %p142_p13, %p141_p12 }
  0x1f   :  { %p144_p1 = pnand %p143_p0, %p137_p11 }
  0x21   :  { %147 = shalt.err (!%p144_p1)
}
  0x22   :  { %32 = dma.hbm_to_vmem [thread:$0]  %s278_s1, 128, %s30_s15, [#allocation6]  }
  0x23   :  { %192 = dma.done.wait [#allocation3], 128  }
  0x24   :  { %193 = vsyncadd [#allocation3], 4294967168 }
  0x25   :  { %194 = dma.done.wait [#allocation6], 128  }
  0x26   :  { %195 = vsyncadd [#allocation6], 4294967168  ;;  %v40_v0 = vld [vmem:[#allocation2] sm:$0xff]  ;;  %vm42_vm0 = vcmask 261120   ;;  %v54_v1 = vld [vmem:[#allocation5] sm:$0xff]  ;;  %s202_s1 = smov [#allocation7]  }
  0x27   :  { %v41_v2 = vmul.f32 %v40_v0, %v40_v0  ;;  %v55_v3 = vmul.f32 %v54_v1, %v54_v1  ;;  %s71_s8 = sshll.u32 %s202_s1, 4  ;;  %vm50_vm1 = vcmask 257024   ;;  %vm52_vm2 = vcmask 1043712   ;;  %s203_s9 = smov [#allocation8]   ;;  %s72_s8 = int_to_ptr.vmem [resolvable:$true] %s71_s8 }
  0x28   :  { %s81_s10 = sshll.u32 %s203_s9, 4  ;;  %v204_v15 = vmov 0   ;;  %s148_s11 = scalar_lea.vmem %s72_s8, 64  ;;  %s82_s10 = int_to_ptr.vmem [resolvable:$true] %s81_s10 }
  0x29   :  { %v43_v4 = vsel %vm42_vm0, %v41_v2, 0.0  ;;  %v56_v5 = vsel %vm42_vm0, %v55_v3, 0.0  ;;  %p149_p2 = scmp.ne.s32.totalorder %s72_s8, %s148_s11  ;;  %p153_p3 = scmp.lt.s32.totalorder %s72_s8, %s72_s8 }
  0x2a   :  { %44 = vadd.xlane.f32.xlu0 %v43_v4  ;;  %p154_p4 = scmp.lt.s32.totalorder %s148_s11, %s148_s11 }
  0x2c   :  { %p155_p5 = por %p154_p4, %p153_p3 }
  0x2e   :  { %57 = vadd.xlane.f32.xlu0 %v56_v5  ;;  %p156_p6 = pnand %p155_p5, %p149_p2 }
  0xb7   :  { %v45_v6 = vpop.xlane.xlu0 %44 }
  0xb8   :  { %v46_v7 = vmax.f32 %v45_v6, 1e-24 }
  0xba   :  { %100 = vrsqrt.f32 %v46_v7 }
  0xbb   :  { %v58_v8 = vpop.xlane.xlu0 %57 }
  0xbc   :  { %v59_v9 = vmax.f32 %v58_v8, 1e-24 }
  0xbe   :  { %102 = vrsqrt.f32 %v59_v9 }
  0xc4   :  { %v101_v10 = vpop.eup %100 }
  0xc5   :  { %v48_v11 = vmul.f32 %v101_v10, %v40_v0 }
  0xc7   :  { %v49_v12 = vpack.c.bf16 %v48_v11, %v48_v11 }
  0xc8   :  { %v103_v13 = vpop.eup %102 }
  0xc9   :  { %51 = vst.msk [vmem:[#allocation7] sm:$0xf] %vm50_vm1, %v49_v12  ;;  %v61_v14 = vmul.f32 %v103_v13, %v54_v1 }
  0xca   :  { %53 = vst.msk [vmem:[#allocation7] sm:$0xf] %vm52_vm2, %v204_v15 }
  0xcb   :  { %159 = shalt.err (!%p156_p6)
}
  0xcc   :  { %s160_s14 = scalar_lea.hbm %s279_s2, 64 }
  0xcd   :  { %p161_p7 = scmp.ne.s32.totalorder %s279_s2, %s160_s14  ;;  %p164_p8 = scmp.lt.u32.totalorder %s160_s14, %s279_s2 }
  0xcf   :  { %p166_p9 = pnand %p164_p8, %p161_p7 }
  0xd1   :  { %169 = shalt.err (!%p166_p9)
}
  0xd2   :  { %74 = dma.vmem_to_hbm [thread:$0]  %s72_s8, 64, %s279_s2, [#allocation4]   ;;  %v62_v16 = vpack.c.bf16 %v61_v14, %v61_v14 }
  0xd3   :  { %s170_s21 = scalar_lea.vmem %s82_s10, 64  ;;  %p175_p11 = scmp.lt.s32.totalorder %s82_s10, %s82_s10 }
  0xd4   :  { %63 = vst.msk [vmem:[#allocation8] sm:$0xf] %vm50_vm1, %v62_v16  ;;  %p171_p10 = scmp.ne.s32.totalorder %s82_s10, %s170_s21  ;;  %p176_p12 = scmp.lt.s32.totalorder %s170_s21, %s170_s21 }
  0xd5   :  { %64 = vst.msk [vmem:[#allocation8] sm:$0xf] %vm52_vm2, %v204_v15 }
  0xd6   :  { %p177_p13 = por %p176_p12, %p175_p11 }
  0xd8   :  { %p178_p0 = pnand %p177_p13, %p171_p10 }
  0xda   :  { %181 = shalt.err (!%p178_p0)
}
  0xdb   :  { %s182_s24 = scalar_lea.hbm %s280_s3, 64 }
  0xdc   :  { %p183_p1 = scmp.ne.s32.totalorder %s280_s3, %s182_s24  ;;  %p186_p2 = scmp.lt.u32.totalorder %s182_s24, %s280_s3 }
  0xde   :  { %p188_p3 = pnand %p186_p2, %p183_p1 }
  0xe0   :  { %191 = shalt.err (!%p188_p3)
}
  0xe1   :  { %84 = dma.vmem_to_hbm [thread:$0]  %s82_s10, 64, %s280_s3, [#allocation9]  }
  0xe2   :  { %196 = dma.done.wait [#allocation4], 64  }
  0xe3   :  { %197 = vsyncadd [#allocation4], 4294967232 }
  0xe4   :  { %198 = dma.done.wait [#allocation9], 64  }
  0xe5   :  { %199 = vsyncadd [#allocation9], 4294967232 }
  0xe6   :  { %91 = vsyncpa [#allocation3], 1 }
  0xe7   :  { %92 = vsyncpa [#allocation6], 1 }
  0xe8   :  { %93 = vsyncpa [#allocation4], 1 }
  0xe9   :  { %94 = vsyncpa [#allocation9], 1 }

</bundles_post_ra>
